<compile_context>
chip_gen: v6e
topology: v6e:2x2x1
jax: 0.10.0
libtpu: 0.0.40
codegen_flags: <defaults>
</compile_context>

<pallas_src>
import jax
import jax.numpy as jnp
from jax.experimental import pallas as pl
from jax.experimental.pallas import tpu as pltpu

# ---------------- config (small, deterministic) ----------------
B = 16                     # batch
T = 8                      # sequence length
E = 16                     # word embedding dim
ENC_LSTM_DIM = 32
H2 = 2 * ENC_LSTM_DIM      # encoder output dim = 64
INPUTDIM = 4 * H2          # 256
FC_DIM = 64
N_CLASSES = 3
N_PAD = 128                # lane-dense padded classifier width
BT = B * T                 # 128 encoder rows per sentence


def nlinet_kernel(s1_ref, s2_ref, wenc_ref, wcls_ref, bias_ref,
                  out_ref, feat_ref):
    # ---- surrogate encoder: one (128,16)@(16,64) dot per sentence ----
    p1 = jnp.dot(s1_ref[...], wenc_ref[...], preferred_element_type=jnp.float32)
    p2 = jnp.dot(s2_ref[...], wenc_ref[...], preferred_element_type=jnp.float32)
    benc = bias_ref[0:1, 0:H2]                               # (1, H2)
    # Max-pool over time.  (B*T, H2) -> (B, T, H2) splits rows into whole
    # sublane tiles (T == 8), so the axis=1 max stays an in-vreg sublane
    # reduce (no relayout).  Bias is time-invariant, so adding it after the
    # pool is identical.
    u = jnp.max(p1.reshape(B, T, H2), axis=1) + benc         # (B, H2)
    v = jnp.max(p2.reshape(B, T, H2), axis=1) + benc         # (B, H2)

    # ---- features = cat(u, v, |u-v|, u*v), assembled in a VMEM scratch so
    # the first classifier layer is ONE (B,256)@(256,128) MXU matmul.
    feat_ref[:, 0 * H2:1 * H2] = u
    feat_ref[:, 1 * H2:2 * H2] = v
    feat_ref[:, 2 * H2:3 * H2] = jnp.abs(u - v)
    feat_ref[:, 3 * H2:4 * H2] = u * v

    # ---- classifier MLP (Dropout(p=0) is identity).  Weights are stacked
    # along sublanes in wcls and zero-padded to 128 lanes, biases zero-padded,
    # so every intermediate stays lane-dense and pad columns stay exactly 0
    # (tanh(0) == 0).
    h1 = jnp.tanh(
        jnp.dot(feat_ref[...], wcls_ref[0:INPUTDIM, :],
                preferred_element_type=jnp.float32) + bias_ref[1:2, :])
    h2 = jnp.tanh(
        jnp.dot(h1, wcls_ref[INPUTDIM:INPUTDIM + N_PAD, :],
                preferred_element_type=jnp.float32) + bias_ref[2:3, :])
    logits = (jnp.dot(h2, wcls_ref[INPUTDIM + N_PAD:INPUTDIM + 2 * N_PAD, :],
                      preferred_element_type=jnp.float32) + bias_ref[3:4, :])
    out_ref[...] = logits.astype(out_ref.dtype)


def pack_params(params):
    """One-time (init-time) packing of parameters into DMA-friendly buffers."""
    wenc, benc, w1, b1, w2, b2, w3, b3 = params

    # Classifier weights: zero-pad to 128 lanes and stack along sublanes.
    #   rows [0, 256)       : W1  (256, 64) in cols [0, 64)
    #   rows [256, 384)     : W2  (64, 64)  in rows [256, 320), cols [0, 64)
    #   rows [384, 512)     : W3  (64, 3)   in rows [384, 448), cols [0, 3)
    wcls = jnp.zeros((INPUTDIM + 2 * N_PAD, N_PAD), jnp.float32)
    wcls = wcls.at[0:INPUTDIM, 0:FC_DIM].set(w1)
    wcls = wcls.at[INPUTDIM:INPUTDIM + FC_DIM, 0:FC_DIM].set(w2)
    wcls = wcls.at[INPUTDIM + N_PAD:INPUTDIM + N_PAD + FC_DIM, 0:N_CLASSES].set(w3)

    # Biases packed into one (4, 128) buffer, zero-padded.
    bias = jnp.zeros((4, N_PAD), jnp.float32)
    bias = bias.at[0, 0:H2].set(benc[0])
    bias = bias.at[1, 0:FC_DIM].set(b1[0])
    bias = bias.at[2, 0:FC_DIM].set(b2[0])
    bias = bias.at[3, 0:N_CLASSES].set(b3[0])

    return wenc, wcls, bias


@jax.jit
def nlinet_forward(s1, s2, packed):
    wenc, wcls, bias = packed
    s1f = s1.reshape(BT, E)      # metadata-only
    s2f = s2.reshape(BT, E)      # metadata-only

    cost = pl.CostEstimate(
        flops=2 * (2 * BT * E * H2
                   + B * INPUTDIM * N_PAD
                   + B * N_PAD * N_PAD
                   + B * N_PAD * N_PAD),
        transcendentals=2 * B * N_PAD,
        bytes_accessed=4 * (2 * BT * E + E * H2
                            + (INPUTDIM + 2 * N_PAD) * N_PAD
                            + 4 * N_PAD
                            + B * N_PAD),
    )

    vmem_spec = pl.BlockSpec(memory_space=pltpu.MemorySpace.VMEM)
    out_pad = pl.pallas_call(
        nlinet_kernel,
        out_shape=jax.ShapeDtypeStruct((B, N_PAD), jnp.float32),
        in_specs=[vmem_spec] * 5,            # gridless: whole arrays in VMEM
        out_specs=vmem_spec,
        scratch_shapes=[pltpu.VMEM((B, INPUTDIM), jnp.float32)],
        cost_estimate=cost,
    )(s1f, s2f, wenc, wcls, bias)

    return out_pad[:, :N_CLASSES]


def reference_forward(s1, s2, params):
    (wenc, benc, w1, b1, w2, b2, w3, b3) = params

    def encode(s):
        proj = jnp.einsum('bte,eh->bth', s, wenc) + benc[None, :, :]
        return jnp.max(proj, axis=1)

    u = encode(s1)
    v = encode(s2)
    feats = jnp.concatenate([u, v, jnp.abs(u - v), u * v], axis=-1)
    h1 = jnp.tanh(feats @ w1 + b1)
    h2 = jnp.tanh(h1 @ w2 + b2)
    return h2 @ w3 + b3


if __name__ == "__main__":
    key = jax.random.PRNGKey(0)
    ks = jax.random.split(key, 10)

    s1 = jax.random.normal(ks[0], (B, T, E), jnp.float32)
    s2 = jax.random.normal(ks[1], (B, T, E), jnp.float32)

    def init(k, shape, fan_in):
        return (jax.random.uniform(k, shape, jnp.float32, -1.0, 1.0)
                / jnp.sqrt(jnp.float32(fan_in)))

    params = (
        init(ks[2], (E, H2), E),                    # encoder projection
        init(ks[3], (1, H2), E),                    # encoder bias
        init(ks[4], (INPUTDIM, FC_DIM), INPUTDIM),  # Linear(inputdim, fc_dim)
        init(ks[5], (1, FC_DIM), INPUTDIM),
        init(ks[6], (FC_DIM, FC_DIM), FC_DIM),      # Linear(fc_dim, fc_dim)
        init(ks[7], (1, FC_DIM), FC_DIM),
        init(ks[8], (FC_DIM, N_CLASSES), FC_DIM),   # Linear(fc_dim, n_classes)
        init(ks[9], (1, N_CLASSES), FC_DIM),
    )

    # One-time packing (hoisted out of the per-call path).
    packed = jax.tree_util.tree_map(jax.block_until_ready, pack_params(params))

    out = nlinet_forward(s1, s2, packed)
    out = jax.block_until_ready(out)

    ref = reference_forward(s1, s2, params)
    assert out.shape == (B, N_CLASSES)
    assert jnp.allclose(out, ref, rtol=1e-4, atol=1e-4)

    print("KERNEL_OK")
</pallas_src>

<mosaic_0001>
module attributes {stable_mosaic.version = 11 : i64} {
  func.func @nlinet_kernel(%arg0: memref<128x16xf32, #tpu.memory_space<vmem>>, %arg1: memref<128x16xf32, #tpu.memory_space<vmem>>, %arg2: memref<16x64xf32, #tpu.memory_space<vmem>>, %arg3: memref<512x128xf32, #tpu.memory_space<vmem>>, %arg4: memref<4x128xf32, #tpu.memory_space<vmem>>, %arg5: memref<16x128xf32, #tpu.memory_space<vmem>>, %arg6: memref<16x256xf32, #tpu.memory_space<vmem>>) attributes {dimension_semantics = [], scalar_prefetch = 0 : i64, scratch_operands = 1 : i64, tpu.core_type = #tpu.core_type<tc>} {
    %c0 = arith.constant 0 : index
    %c0_0 = arith.constant 0 : index
    %0 = vector.load %arg0[%c0, %c0_0] : memref<128x16xf32, #tpu.memory_space<vmem>>, vector<128x16xf32>
    %c0_1 = arith.constant 0 : index
    %c0_2 = arith.constant 0 : index
    %1 = vector.load %arg2[%c0_1, %c0_2] : memref<16x64xf32, #tpu.memory_space<vmem>>, vector<16x64xf32>
    %cst = arith.constant dense<0.000000e+00> : vector<128x64xf32>
    %2 = tpu.matmul %0, %1, %cst {dimension_numbers = #tpu.dot_dimension_numbers<[1], [0], [0], [1], [0, 0, 1, 1], [], []>} : vector<128x16xf32>, vector<16x64xf32>, vector<128x64xf32> -> vector<128x64xf32>
    %c0_3 = arith.constant 0 : index
    %c0_4 = arith.constant 0 : index
    %3 = vector.load %arg1[%c0_3, %c0_4] : memref<128x16xf32, #tpu.memory_space<vmem>>, vector<128x16xf32>
    %c0_5 = arith.constant 0 : index
    %c0_6 = arith.constant 0 : index
    %4 = vector.load %arg2[%c0_5, %c0_6] : memref<16x64xf32, #tpu.memory_space<vmem>>, vector<16x64xf32>
    %cst_7 = arith.constant dense<0.000000e+00> : vector<128x64xf32>
    %5 = tpu.matmul %3, %4, %cst_7 {dimension_numbers = #tpu.dot_dimension_numbers<[1], [0], [0], [1], [0, 0, 1, 1], [], []>} : vector<128x16xf32>, vector<16x64xf32>, vector<128x64xf32> -> vector<128x64xf32>
    %c0_8 = arith.constant 0 : index
    %c0_9 = arith.constant 0 : index
    %6 = vector.load %arg4[%c0_8, %c0_9] : memref<4x128xf32, #tpu.memory_space<vmem>>, vector<1x64xf32>
    %7 = vector.shape_cast %2 : vector<128x64xf32> to vector<16x8x64xf32>
    %cst_10 = arith.constant dense<0xFF800000> : vector<16x64xf32>
    %8 = vector.multi_reduction <maximumf>, %7, %cst_10 [1] : vector<16x8x64xf32> to vector<16x64xf32>
    %9 = vector.broadcast %6 : vector<1x64xf32> to vector<16x64xf32>
    %10 = arith.addf %8, %9 : vector<16x64xf32>
    %11 = vector.shape_cast %5 : vector<128x64xf32> to vector<16x8x64xf32>
    %cst_11 = arith.constant dense<0xFF800000> : vector<16x64xf32>
    %12 = vector.multi_reduction <maximumf>, %11, %cst_11 [1] : vector<16x8x64xf32> to vector<16x64xf32>
    %13 = vector.broadcast %6 : vector<1x64xf32> to vector<16x64xf32>
    %14 = arith.addf %12, %13 : vector<16x64xf32>
    %c0_12 = arith.constant 0 : index
    %c0_13 = arith.constant 0 : index
    %15 = vector.load %arg6[%c0_12, %c0_13] : memref<16x256xf32, #tpu.memory_space<vmem>>, vector<16x64xf32>
    tpu.vector_store %arg6[%c0_12, %c0_13], %10 {strides = array<i32>} : memref<16x256xf32, #tpu.memory_space<vmem>>, vector<16x64xf32>,
    %c0_14 = arith.constant 0 : index
    %c64 = arith.constant 64 : index
    %16 = vector.load %arg6[%c0_14, %c64] : memref<16x256xf32, #tpu.memory_space<vmem>>, vector<16x64xf32>
    tpu.vector_store %arg6[%c0_14, %c64], %14 {strides = array<i32>} : memref<16x256xf32, #tpu.memory_space<vmem>>, vector<16x64xf32>,
    %17 = arith.subf %10, %14 : vector<16x64xf32>
    %18 = math.absf %17 : vector<16x64xf32>
    %c0_15 = arith.constant 0 : index
    %c128 = arith.constant 128 : index
    %19 = vector.load %arg6[%c0_15, %c128] : memref<16x256xf32, #tpu.memory_space<vmem>>, vector<16x64xf32>
    tpu.vector_store %arg6[%c0_15, %c128], %18 {strides = array<i32>} : memref<16x256xf32, #tpu.memory_space<vmem>>, vector<16x64xf32>,
    %20 = arith.mulf %10, %14 : vector<16x64xf32>
    %c0_16 = arith.constant 0 : index
    %c192 = arith.constant 192 : index
    %21 = vector.load %arg6[%c0_16, %c192] : memref<16x256xf32, #tpu.memory_space<vmem>>, vector<16x64xf32>
    tpu.vector_store %arg6[%c0_16, %c192], %20 {strides = array<i32>} : memref<16x256xf32, #tpu.memory_space<vmem>>, vector<16x64xf32>,
    %c0_17 = arith.constant 0 : index
    %c0_18 = arith.constant 0 : index
    %22 = vector.load %arg6[%c0_17, %c0_18] : memref<16x256xf32, #tpu.memory_space<vmem>>, vector<16x256xf32>
    %c0_19 = arith.constant 0 : index
    %c0_20 = arith.constant 0 : index
    %23 = vector.load %arg3[%c0_19, %c0_20] : memref<512x128xf32, #tpu.memory_space<vmem>>, vector<256x128xf32>
    %cst_21 = arith.constant dense<0.000000e+00> : vector<16x128xf32>
    %24 = tpu.matmul %22, %23, %cst_21 {dimension_numbers = #tpu.dot_dimension_numbers<[1], [0], [0], [1], [0, 0, 1, 1], [], []>} : vector<16x256xf32>, vector<256x128xf32>, vector<16x128xf32> -> vector<16x128xf32>
    %c1 = arith.constant 1 : index
    %c0_22 = arith.constant 0 : index
    %25 = vector.load %arg4[%c1, %c0_22] : memref<4x128xf32, #tpu.memory_space<vmem>>, vector<1x128xf32>
    %26 = vector.broadcast %25 : vector<1x128xf32> to vector<16x128xf32>
    %27 = arith.addf %24, %26 : vector<16x128xf32>
    %28 = math.tanh %27 : vector<16x128xf32>
    %c256 = arith.constant 256 : index
    %c0_23 = arith.constant 0 : index
    %29 = vector.load %arg3[%c256, %c0_23] : memref<512x128xf32, #tpu.memory_space<vmem>>, vector<128x128xf32>
    %cst_24 = arith.constant dense<0.000000e+00> : vector<16x128xf32>
    %30 = tpu.matmul %28, %29, %cst_24 {dimension_numbers = #tpu.dot_dimension_numbers<[1], [0], [0], [1], [0, 0, 1, 1], [], []>} : vector<16x128xf32>, vector<128x128xf32>, vector<16x128xf32> -> vector<16x128xf32>
    %c2 = arith.constant 2 : index
    %c0_25 = arith.constant 0 : index
    %31 = vector.load %arg4[%c2, %c0_25] : memref<4x128xf32, #tpu.memory_space<vmem>>, vector<1x128xf32>
    %32 = vector.broadcast %31 : vector<1x128xf32> to vector<16x128xf32>
    %33 = arith.addf %30, %32 : vector<16x128xf32>
    %34 = math.tanh %33 : vector<16x128xf32>
    %c384 = arith.constant 384 : index
    %c0_26 = arith.constant 0 : index
    %35 = vector.load %arg3[%c384, %c0_26] : memref<512x128xf32, #tpu.memory_space<vmem>>, vector<128x128xf32>
    %cst_27 = arith.constant dense<0.000000e+00> : vector<16x128xf32>
    %36 = tpu.matmul %34, %35, %cst_27 {dimension_numbers = #tpu.dot_dimension_numbers<[1], [0], [0], [1], [0, 0, 1, 1], [], []>} : vector<16x128xf32>, vector<128x128xf32>, vector<16x128xf32> -> vector<16x128xf32>
    %c3 = arith.constant 3 : index
    %c0_28 = arith.constant 0 : index
    %37 = vector.load %arg4[%c3, %c0_28] : memref<4x128xf32, #tpu.memory_space<vmem>>, vector<1x128xf32>
    %38 = vector.broadcast %37 : vector<1x128xf32> to vector<16x128xf32>
    %39 = arith.addf %36, %38 : vector<16x128xf32>
    %c0_29 = arith.constant 0 : index
    %c0_30 = arith.constant 0 : index
    %40 = vector.load %arg5[%c0_29, %c0_30] : memref<16x128xf32, #tpu.memory_space<vmem>>, vector<16x128xf32>
    tpu.vector_store %arg5[%c0_29, %c0_30], %39 {strides = array<i32>} : memref<16x128xf32, #tpu.memory_space<vmem>>, vector<16x128xf32>,
    return
  }
}

</mosaic_0001>

<bundles_post_ra>
// kernel: nlinet_forward.1
= control target key start
LH: loop header
LB: loop body
LE: loop exit
PB: predicated region body
PF: predicated region fallthrough
CT: control target
= control target key end

     0   :  { %10 = vsyncpa [#allocation4], 0  ;;  %s2186_s0 = inlined_call_operand.hbm [shape: f32[128,16], index: 0, kind: input, shape index: {}]   ;;  %s2187_s1 = inlined_call_operand.hbm [shape: f32[128,16], index: 1, kind: input, shape index: {}]   ;;  %s2188_s2 = inlined_call_operand.hbm [shape: f32[16,64], index: 2, kind: input, shape index: {}]   ;;  %s2189_s3 = inlined_call_operand.hbm [shape: f32[512,128], index: 3, kind: input, shape index: {}]   ;;  %s2190_s4 = inlined_call_operand.vmem [shape: f32[4,128], index: 4, kind: input, shape index: {}]   ;;  %s2191_s5 = inlined_call_operand.vmem [shape: f32[16,128], index: 5, kind: output, shape index: {}]  }
   0x1   :  { %11 = vsyncpa [#allocation6], 0 }
   0x2   :  { %12 = vsyncpa [#allocation9], 0  ;;  %s1708_s18 = smov [#allocation5]   ;;  %s1709_s20 = smov [#allocation3]  }
   0x3   :  { %s30_s19 = sshll.u32 %s1708_s18, 4  ;;  %s18_s21 = sshll.u32 %s1709_s20, 4  ;;  %s31_s19 = int_to_ptr.vmem [resolvable:$true] %s30_s19  ;;  %s19_s21 = int_to_ptr.vmem [resolvable:$true] %s18_s21 }
   0x4   :  { %s1630_s22 = scalar_lea.vmem %s31_s19, 2048  ;;  %p1635_p1 = scmp.lt.s32.totalorder %s31_s19, %s31_s19 }
   0x5   :  { %p1631_p0 = scmp.ne.s32.totalorder %s31_s19, %s1630_s22  ;;  %p1636_p2 = scmp.lt.s32.totalorder %s1630_s22, %s1630_s22 }
   0x7   :  { %p1637_p3 = por %p1636_p2, %p1635_p1 }
   0x9   :  { %p1638_p4 = pnand %p1637_p3, %p1631_p0 }
   0xb   :  { %1641 = shalt.err (!%p1638_p4)
}
   0xc   :  { %s1710_s23 = smov 128   ;;  %s1711_s24 = smov 8  }
   0xd   :  { %36 = dma.hbm_to_vmem [thread:$0]  %s2187_s1, 2048, %s31_s19, [#allocation6], %s1710_s23, %s1710_s23, %s1711_s24  }
   0xe   :  { %s1650_s27 = scalar_lea.vmem %s19_s21, 2048  ;;  %p1655_p6 = scmp.lt.s32.totalorder %s19_s21, %s19_s21 }
   0xf   :  { %p1651_p5 = scmp.ne.s32.totalorder %s19_s21, %s1650_s27  ;;  %p1656_p7 = scmp.lt.s32.totalorder %s1650_s27, %s1650_s27 }
  0x11   :  { %p1657_p8 = por %p1656_p7, %p1655_p6 }
  0x13   :  { %p1658_p9 = pnand %p1657_p8, %p1651_p5 }
  0x15   :  { %1661 = shalt.err (!%p1658_p9)
}
  0x16   :  { %24 = dma.hbm_to_vmem [thread:$0]  %s2186_s0, 2048, %s19_s21, [#allocation4], %s1710_s23, %s1710_s23, %s1711_s24  }
  0x17   :  { %s1712_s30 = smov [#allocation7]   ;;  %s1713_s7 = smov [#allocation8]  }
  0x18   :  { %s42_s6 = sshll.u32 %s1712_s30, 4  ;;  %s54_s8 = sshll.u32 %s1713_s7, 4  ;;  %s43_s6 = int_to_ptr.vmem [resolvable:$true] %s42_s6  ;;  %s55_s8 = int_to_ptr.vmem [resolvable:$true] %s54_s8 }
  0x19   :  { %s1670_s1 = scalar_lea.vmem %s43_s6, 256  ;;  %p1675_p11 = scmp.lt.s32.totalorder %s43_s6, %s43_s6 }
  0x1a   :  { %p1671_p10 = scmp.ne.s32.totalorder %s43_s6, %s1670_s1  ;;  %p1676_p12 = scmp.lt.s32.totalorder %s1670_s1, %s1670_s1 }
  0x1c   :  { %p1677_p13 = por %p1676_p12, %p1675_p11 }
  0x1e   :  { %p1678_p0 = pnand %p1677_p13, %p1671_p10 }
  0x20   :  { %1681 = shalt.err (!%p1678_p0)
}
  0x21   :  { %48 = dma.hbm_to_vmem [thread:$0]  %s2188_s2, 256, %s43_s6, [#allocation6], %s1710_s23, %s1710_s23, %s1711_s24  }
  0x22   :  { %s1690_s0 = scalar_lea.vmem %s55_s8, 8192  ;;  %p1695_p2 = scmp.lt.s32.totalorder %s55_s8, %s55_s8 }
  0x23   :  { %p1691_p1 = scmp.ne.s32.totalorder %s55_s8, %s1690_s0  ;;  %p1696_p3 = scmp.lt.s32.totalorder %s1690_s0, %s1690_s0 }
  0x25   :  { %p1697_p4 = por %p1696_p3, %p1695_p2 }
  0x27   :  { %p1698_p5 = pnand %p1697_p4, %p1691_p1 }
  0x29   :  { %1701 = shalt.err (!%p1698_p5)
}
  0x2a   :  { %60 = dma.hbm_to_vmem [thread:$0]  %s2189_s3, 8192, %s55_s8, [#allocation9], %s1710_s23, %s1710_s23, %s1711_s24  }
  0x2b   :  { %1702 = dma.done.wait [#allocation4], 2048  }
  0x2c   :  { %1703 = vsyncadd [#allocation4], 4294965248 }
  0x2d   :  { %1704 = dma.done.wait [#allocation6], 2304  }
  0x2e   :  { %1705 = vsyncadd [#allocation6], 4294964992 }
  0x2f   :  { %1706 = dma.done.wait [#allocation9], 8192  }
  0x30   :  { %1707 = vsyncadd [#allocation9], 4294959104  ;;  %v92_v0 = vld [vmem:[#allocation7 + $0x8] sm:$0xff]  ;;  %v91_v1 = vld [vmem:[#allocation7] sm:$0xff]  ;;  %vm93_vm0 = vcmask 130048   ;;  %vm497_vm1 = vcmask 523264  }
  0x31   :  { %1481 = vmatprep.subr.mxu0 %v92_v0  ;;  %1509 = vmatprep.subr.mxu1 %v92_v0  ;;  %v75_v2 = vld [vmem:[#allocation3] sm:$0xff]  ;;  %v76_v4 = vld [vmem:[#allocation3 + $0x8] sm:$0xff]  ;;  %v77_v6 = vld [vmem:[#allocation3 + $0x10] sm:$0xff]  ;;  %vm775_vm2 = vcmask 1041409   ;;  %vm778_vm3 = vcmask 1042434   ;;  %vm781_vm4 = vcmask 1043459  }
  0x32   :  { %1482 = vmatpush3.msra.mxu0 %v92_v0  ;;  %1510 = vmatpush3.msra.mxu1 %v92_v0  ;;  %v287_v3 = vld [vmem:[#allocation5] sm:$0xff]  ;;  %v288_v5 = vld [vmem:[#allocation5 + $0x8] sm:$0xff]  ;;  %v289_v7 = vld [vmem:[#allocation5 + $0x10] sm:$0xff]  ;;  %vm784_vm5 = vcmask 1044484   ;;  %vm787_vm6 = vcmask 1045509   ;;  %vm790_vm7 = vcmask 1046534  }
  0x33   :  { %1483 = vmatprep.subr.mxu0 %v91_v1  ;;  %1511 = vmatprep.subr.mxu1 %v91_v1  ;;  %v78_v8 = vld [vmem:[#allocation3 + $0x18] sm:$0xff]  ;;  %v79_v10 = vld [vmem:[#allocation3 + $0x20] sm:$0xff]  ;;  %v80_v12 = vld [vmem:[#allocation3 + $0x28] sm:$0xff]  ;;  %vm793_vm8 = vcmask 1047559   ;;  %s1714_s13 = smov 64   ;;  %vm863_vm9 = vcmask 1048064  }
  0x34   :  { %1484 = vmatpush3.msra.mxu0 %v91_v1  ;;  %1485 = vmatprep.mubr.msk.f32.mxu0 %vm93_vm0, %v75_v2  ;;  %v290_v9 = vld [vmem:[#allocation5 + $0x18] sm:$0xff]  ;;  %v291_v11 = vld [vmem:[#allocation5 + $0x20] sm:$0xff]  ;;  %v292_v13 = vld [vmem:[#allocation5 + $0x28] sm:$0xff] }
  0x35   :  { %1512 = vmatpush3.msra.mxu1 %v91_v1  ;;  %1513 = vmatprep.mubr.msk.f32.mxu1 %vm93_vm0, %v287_v3  ;;  %v81_v14 = vld [vmem:[#allocation3 + $0x30] sm:$0xff]  ;;  %v82_v16 = vld [vmem:[#allocation3 + $0x38] sm:$0xff]  ;;  %v83_v18 = vld [vmem:[#allocation3 + $0x40] sm:$0xff] }
  0x36   :  { %1486 = vmatmul.mubr.msk.f32.vlgmr.msra.gmra.mxu0 %vm93_vm0, %v76_v4  ;;  %1514 = vmatmul.mubr.msk.f32.vlgmr.msra.gmra.mxu1 %vm93_vm0, %v288_v5  ;;  %v293_v15 = vld [vmem:[#allocation5 + $0x30] sm:$0xff]  ;;  %v294_v17 = vld [vmem:[#allocation5 + $0x38] sm:$0xff]  ;;  %v295_v19 = vld [vmem:[#allocation5 + $0x40] sm:$0xff] }
  0x37   :  { %1488 = vmatprep.mubr.msk.f32.mxu0 %vm93_vm0, %v77_v6  ;;  %1516 = vmatprep.mubr.msk.f32.mxu1 %vm93_vm0, %v289_v7  ;;  %v84_v20 = vld [vmem:[#allocation3 + $0x48] sm:$0xff]  ;;  %v85_v22 = vld [vmem:[#allocation3 + $0x50] sm:$0xff]  ;;  %v86_v24 = vld [vmem:[#allocation3 + $0x58] sm:$0xff] }
  0x38   :  { %v296_v21 = vld [vmem:[#allocation5 + $0x48] sm:$0xff]  ;;  %v297_v23 = vld [vmem:[#allocation5 + $0x50] sm:$0xff]  ;;  %v298_v25 = vld [vmem:[#allocation5 + $0x58] sm:$0xff] }
  0x39   :  { %v87_v26 = vld [vmem:[#allocation3 + $0x60] sm:$0xff]  ;;  %v88_v28 = vld [vmem:[#allocation3 + $0x68] sm:$0xff]  ;;  %v89_v30 = vld [vmem:[#allocation3 + $0x70] sm:$0xff] }
  0x3a   :  { %1489 = vmatmul.mubr.msk.f32.gmra.mxu0 %vm93_vm0, %v78_v8  ;;  %1517 = vmatmul.mubr.msk.f32.gmra.mxu1 %vm93_vm0, %v290_v9  ;;  %v299_v27 = vld [vmem:[#allocation5 + $0x60] sm:$0xff]  ;;  %v300_v29 = vld [vmem:[#allocation5 + $0x68] sm:$0xff]  ;;  %v301_v31 = vld [vmem:[#allocation5 + $0x70] sm:$0xff] }
  0x3b   :  { %1491 = vmatprep.mubr.msk.f32.mxu0 %vm93_vm0, %v79_v10  ;;  %1519 = vmatprep.mubr.msk.f32.mxu1 %vm93_vm0, %v291_v11  ;;  %v90_v32 = vld [vmem:[#allocation3 + $0x78] sm:$0xff]  ;;  %v1049_v34 = vld [vmem:[#allocation8 + $0xf8] sm:$0xff]  ;;  %v1048_v36 = vld [vmem:[#allocation8 + $0xf0] sm:$0xff] }
  0x3c   :  { %v302_v33 = vld [vmem:[#allocation5 + $0x78] sm:$0xff]  ;;  %v1033_v35 = vld [vmem:[#allocation8 + $0x78] sm:$0xff]  ;;  %1407 = vmatprep.subr.mxu0 %v1049_v34  ;;  %v1032_v37 = vld [vmem:[#allocation8 + $0x70] sm:$0xff] }
  0x3d   :  { %1408 = vmatpush3.msra.mxu0 %v1033_v35  ;;  %v1047_v38 = vld [vmem:[#allocation8 + $0xe8] sm:$0xff]  ;;  %v1046_v40 = vld [vmem:[#allocation8 + $0xe0] sm:$0xff]  ;;  %v1045_v42 = vld [vmem:[#allocation8 + $0xd8] sm:$0xff] }
  0x3e   :  { %1492 = vmatmul.mubr.msk.f32.gmra.mxu0 %vm93_vm0, %v80_v12  ;;  %1520 = vmatmul.mubr.msk.f32.gmra.mxu1 %vm93_vm0, %v292_v13  ;;  %v1031_v39 = vld [vmem:[#allocation8 + $0x68] sm:$0xff]  ;;  %v1030_v41 = vld [vmem:[#allocation8 + $0x60] sm:$0xff]  ;;  %v1029_v43 = vld [vmem:[#allocation8 + $0x58] sm:$0xff] }
  0x3f   :  { %1494 = vmatprep.mubr.msk.f32.mxu0 %vm93_vm0, %v81_v14  ;;  %1522 = vmatprep.mubr.msk.f32.mxu1 %vm93_vm0, %v293_v15  ;;  %v1044_v44 = vld [vmem:[#allocation8 + $0xd0] sm:$0xff]  ;;  %v1043_v46 = vld [vmem:[#allocation8 + $0xc8] sm:$0xff]  ;;  %v1042_v48 = vld [vmem:[#allocation8 + $0xc0] sm:$0xff] }
  0x40   :  { %1409 = vmatprep.subr.mxu0 %v1048_v36  ;;  %v1028_v45 = vld [vmem:[#allocation8 + $0x50] sm:$0xff]  ;;  %v1027_v47 = vld [vmem:[#allocation8 + $0x48] sm:$0xff]  ;;  %v1026_v49 = vld [vmem:[#allocation8 + $0x40] sm:$0xff] }
  0x41   :  { %1410 = vmatpush3.msra.mxu0 %v1032_v37  ;;  %v1041_v50 = vld [vmem:[#allocation8 + $0xb8] sm:$0xff]  ;;  %v1040_v52 = vld [vmem:[#allocation8 + $0xb0] sm:$0xff] }
  0x42   :  { %1495 = vmatmul.mubr.msk.f32.gmra.mxu0 %vm93_vm0, %v82_v16  ;;  %1523 = vmatmul.mubr.msk.f32.gmra.mxu1 %vm93_vm0, %v294_v17  ;;  %v1025_v51 = vld [vmem:[#allocation8 + $0x38] sm:$0xff]  ;;  %v1024_v53 = vld [vmem:[#allocation8 + $0x30] sm:$0xff] }
  0x43   :  { %1497 = vmatprep.mubr.msk.f32.mxu0 %vm93_vm0, %v83_v18  ;;  %1525 = vmatprep.mubr.msk.f32.mxu1 %vm93_vm0, %v295_v19 }
  0x44   :  { %1411 = vmatprep.subr.mxu0 %v1047_v38 }
  0x45   :  { %1412 = vmatpush3.msra.mxu0 %v1031_v39 }
  0x46   :  { %1498 = vmatmul.mubr.msk.f32.gmra.mxu0 %vm93_vm0, %v84_v20  ;;  %1526 = vmatmul.mubr.msk.f32.gmra.mxu1 %vm93_vm0, %v296_v21 }
  0x47   :  { %1500 = vmatprep.mubr.msk.f32.mxu0 %vm93_vm0, %v85_v22  ;;  %1528 = vmatprep.mubr.msk.f32.mxu1 %vm93_vm0, %v297_v23 }
  0x48   :  { %1413 = vmatprep.subr.mxu0 %v1046_v40 }
  0x49   :  { %1414 = vmatpush3.msra.mxu0 %v1030_v41 }
  0x4a   :  { %1501 = vmatmul.mubr.msk.f32.gmra.mxu0 %vm93_vm0, %v86_v24  ;;  %1529 = vmatmul.mubr.msk.f32.gmra.mxu1 %vm93_vm0, %v298_v25 }
  0x4b   :  { %1503 = vmatprep.mubr.msk.f32.mxu0 %vm93_vm0, %v87_v26  ;;  %1531 = vmatprep.mubr.msk.f32.mxu1 %vm93_vm0, %v299_v27 }
  0x4c   :  { %1415 = vmatprep.subr.mxu0 %v1045_v42 }
  0x4d   :  { %1416 = vmatpush3.msra.mxu0 %v1029_v43 }
  0x4e   :  { %1504 = vmatmul.mubr.msk.f32.gmra.mxu0 %vm93_vm0, %v88_v28  ;;  %1532 = vmatmul.mubr.msk.f32.gmra.mxu1 %vm93_vm0, %v300_v29 }
  0x4f   :  { %1506 = vmatprep.mubr.msk.f32.mxu0 %vm93_vm0, %v89_v30  ;;  %1534 = vmatprep.mubr.msk.f32.mxu1 %vm93_vm0, %v301_v31  ;;  %v1812_v30 = vld [vmem:[%s2190_s4] ss:$0 sm:$0xff] }
  0x50   :  { %1417 = vmatprep.subr.mxu0 %v1044_v44 }
  0x51   :  { %1418 = vmatpush3.msra.mxu0 %v1028_v45 }
  0x52   :  { %1507 = vmatmul.mubr.msk.f32.gmra.mxu0 %vm93_vm0, %v90_v32  ;;  %1535 = vmatmul.mubr.msk.f32.gmra.mxu1 %vm93_vm0, %v302_v33 }
  0x53   :  { %1419 = vmatprep.subr.mxu0 %v1043_v46 }
  0x54   :  { %1420 = vmatpush3.msra.mxu0 %v1027_v47 }
  0x55   :  { %1421 = vmatprep.subr.mxu0 %v1042_v48 }
  0x56   :  { %1422 = vmatpush3.msra.mxu0 %v1026_v49 }
  0x57   :  { %1423 = vmatprep.subr.mxu0 %v1041_v50 }
  0x58   :  { %1424 = vmatpush3.msra.mxu0 %v1025_v51 }
  0x59   :  { %1425 = vmatprep.subr.mxu0 %v1040_v52 }
  0x5a   :  { %1426 = vmatpush3.msra.mxu0 %v1024_v53 }
  0xf6   :  { %v1487_v54 = vpop.f32.mrf.mxu0  ;;  %v1515_v55 = vpop.f32.mrf.mxu1 }
  0xf7   :  { %v505_v56 = vsel %vm497_vm1, %v1487_v54, -inf  ;;  %v637_v57 = vsel %vm497_vm1, %v1515_v55, -inf }
  0xf8   :  { %v506_v58 = vrot.slane %v505_v56, 4  ;;  %v638_v59 = vrot.slane %v637_v57, 4  ;;  %v208_v60 = vpop.f32.mrf.mxu0  ;;  %v417_v61 = vpop.f32.mrf.mxu1 }
  0xf9   :  { %v498_v62 = vsel %vm497_vm1, %v208_v60, -inf  ;;  %v630_v63 = vsel %vm497_vm1, %v417_v61, -inf }
  0xfa   :  { %v507_v0 = vmax.f32 %v505_v56, %v506_v58  ;;  %v639_v1 = vmax.f32 %v637_v57, %v638_v59  ;;  %v499_v2 = vrot.slane %v498_v62, 4  ;;  %v631_v3 = vrot.slane %v630_v63, 4  ;;  %v1490_v4 = vpop.f32.mrf.mxu0  ;;  %v1518_v5 = vpop.f32.mrf.mxu1 }
  0xfb   :  { %v519_v6 = vsel %vm497_vm1, %v1490_v4, -inf  ;;  %v651_v7 = vsel %vm497_vm1, %v1518_v5, -inf }
  0xfc   :  { %v508_v8 = vrot.slane %v507_v0, 2  ;;  %v640_v9 = vrot.slane %v639_v1, 2  ;;  %v500_v10 = vmax.f32 %v498_v62, %v499_v2  ;;  %v632_v11 = vmax.f32 %v630_v63, %v631_v3  ;;  %v218_v12 = vpop.f32.mrf.mxu0  ;;  %v427_v13 = vpop.f32.mrf.mxu1 }
  0xfd   :  { %v520_v14 = vrot.slane %v519_v6, 4  ;;  %v652_v15 = vrot.slane %v651_v7, 4  ;;  %v512_v16 = vsel %vm497_vm1, %v218_v12, -inf  ;;  %v644_v17 = vsel %vm497_vm1, %v427_v13, -inf }
  0xfe   :  { %v509_v18 = vmax.f32 %v507_v0, %v508_v8  ;;  %v641_v19 = vmax.f32 %v639_v1, %v640_v9  ;;  %v501_v20 = vrot.slane %v500_v10, 2  ;;  %v633_v21 = vrot.slane %v632_v11, 2  ;;  %v1493_v47 = vpop.f32.mrf.mxu0  ;;  %v1521_v63 = vpop.f32.mrf.mxu1 }
  0xff   :  { %v521_v22 = vmax.f32 %v519_v6, %v520_v14  ;;  %v653_v23 = vmax.f32 %v651_v7, %v652_v15  ;;  %v513_v24 = vrot.slane %v512_v16, 4  ;;  %v645_v25 = vrot.slane %v644_v17, 4 }
 0x100   :  { %v510_v26 = vrot.slane %v509_v18, 1  ;;  %v642_v27 = vrot.slane %v641_v19, 1  ;;  %v502_v28 = vmax.f32 %v500_v10, %v501_v20  ;;  %v634_v29 = vmax.f32 %v632_v11, %v633_v21  ;;  %v228_v0 = vpop.f32.mrf.mxu0  ;;  %v437_v15 = vpop.f32.mrf.mxu1 }
 0x101   :  { %v522_v31 = vrot.slane %v521_v22, 2  ;;  %v654_v32 = vrot.slane %v653_v23, 2  ;;  %v514_v33 = vmax.f32 %v512_v16, %v513_v24  ;;  %v646_v34 = vmax.f32 %v644_v17, %v645_v25 }
 0x102   :  { %v511_v35 = vmax.f32 %v509_v18, %v510_v26  ;;  %v643_v36 = vmax.f32 %v641_v19, %v642_v27  ;;  %v503_v37 = vrot.slane %v502_v28, 1  ;;  %v635_v38 = vrot.slane %v634_v29, 1  ;;  %v1496_v16 = vpop.f32.mrf.mxu0 }
 0x103   :  { %v523_v39 = vmax.f32 %v521_v22, %v522_v31  ;;  %v655_v40 = vmax.f32 %v653_v23, %v654_v32  ;;  %v515_v41 = vrot.slane %v514_v33, 2  ;;  %v647_v42 = vrot.slane %v646_v34, 2 }
 0x104   :  { %v615_v43 = vadd.f32 %v1812_v30, %v511_v35  ;;  %v743_v44 = vadd.f32 %v1812_v30, %v643_v36  ;;  %v504_v45 = vmax.f32 %v502_v28, %v503_v37  ;;  %v636_v46 = vmax.f32 %v634_v29, %v635_v38  ;;  %v238_v35 = vpop.f32.mrf.mxu0 }
 0x105   :  { %v524_v48 = vrot.slane %v523_v39, 1  ;;  %v656_v49 = vrot.slane %v655_v40, 1  ;;  %v516_v50 = vmax.f32 %v514_v33, %v515_v41  ;;  %v648_v51 = vmax.f32 %v646_v34, %v647_v42  ;;  %v1524_v34 = vpop.f32.mrf.mxu1 }
 0x106   :  { %v774_v52 = vrot.slane %v615_v43, 7  ;;  %v867_v53 = vsub.f32 %v615_v43, %v743_v44  ;;  %v1816_v54 = vmul.f32 %v743_v44, %v615_v43  ;;  %v614_v55 = vadd.f32 %v1812_v30, %v504_v45 }
 0x107   :  { %v742_v56 = vadd.f32 %v1812_v30, %v636_v46  ;;  %v525_v57 = vmax.f32 %v523_v39, %v524_v48  ;;  %v657_v58 = vmax.f32 %v655_v40, %v656_v49  ;;  %v829_v59 = vrot.slane %v743_v44, 7 }
 0x108   :  { %v883_v60 = vand.u32 2147483647, %v867_v53  ;;  %v517_v61 = vrot.slane %v516_v50, 1  ;;  %v649_v62 = vrot.slane %v648_v51, 1  ;;  %v533_v9 = vsel %vm497_vm1, %v1493_v47, -inf }
 0x109   :  { %v866_v2 = vsub.f32 %v614_v55, %v742_v56  ;;  %v1822_v4 = vadd.f32 %v1812_v30, %v525_v57  ;;  %v1825_v5 = vadd.f32 %v1812_v30, %v657_v58  ;;  %v665_v10 = vsel %vm497_vm1, %v1521_v63, -inf }
 0x10a   :  { %v914_v3 = vrot.slane %v883_v60, 7  ;;  %v518_v6 = vmax.f32 %v516_v50, %v517_v61  ;;  %v650_v8 = vmax.f32 %v648_v51, %v649_v62  ;;  %v776_v11 = vsel %vm775_vm2, %v774_v52, %v614_v55  ;;  %v447_v52 = vpop.f32.mrf.mxu1 }
 0x10b   :  { %v882_v7 = vand.u32 2147483647, %v866_v2  ;;  %v1831_v12 = vsel %vm775_vm2, %v829_v59, %v742_v56  ;;  %v869_v13 = vsub.f32 %v1822_v4, %v1825_v5  ;;  %v1837_v14 = vmul.f32 %v1825_v5, %v1822_v4 }
 0x10c   :  { %v1839_v17 = vmul.f32 %v742_v56, %v614_v55  ;;  %v616_v18 = vadd.f32 %v1812_v30, %v518_v6  ;;  %v1843_v19 = vadd.f32 %v1812_v30, %v650_v8  ;;  %v534_v20 = vrot.slane %v533_v9, 4 }
 0x10d   :  { %v1846_v22 = vand.u32 2147483647, %v869_v13  ;;  %v666_v23 = vrot.slane %v665_v10, 4  ;;  %v526_v24 = vsel %vm497_vm1, %v228_v0, -inf  ;;  %v1850_v25 = vsel %vm775_vm2, %v914_v3, %v882_v7 }
 0x10e   :  { %v777_v28 = vrot.slane %v616_v18, 6  ;;  %v535_v31 = vmax.f32 %v533_v9, %v534_v20  ;;  %v527_v33 = vrot.slane %v526_v24, 4  ;;  %v868_v37 = vsub.f32 %v616_v18, %v1843_v19 }
 0x10f   :  { %v667_v32 = vmax.f32 %v665_v10, %v666_v23  ;;  %v1858_v38 = vmul.f32 %v1843_v19, %v616_v18  ;;  %v658_v39 = vsel %vm497_vm1, %v437_v15, -inf  ;;  %v547_v45 = vsel %vm497_vm1, %v1496_v16, -inf  ;;  %v1499_v23 = vpop.f32.mrf.mxu0 }
 0x110   :  { %v536_v40 = vrot.slane %v535_v31, 2  ;;  %v528_v42 = vmax.f32 %v526_v24, %v527_v33  ;;  %v659_v43 = vrot.slane %v658_v39, 4  ;;  %v1862_v44 = vsel %vm778_vm3, %v777_v28, %v776_v11 }
 0x111   :  { %v668_v41 = vrot.slane %v667_v32, 2  ;;  %v679_v46 = vsel %vm497_vm1, %v1524_v34, -inf  ;;  %v540_v47 = vsel %vm497_vm1, %v238_v35, -inf  ;;  %v884_v53 = vand.u32 2147483647, %v868_v37 }
 0x112   :  { %v537_v48 = vmax.f32 %v535_v31, %v536_v40  ;;  %v529_v50 = vrot.slane %v528_v42, 2  ;;  %v660_v51 = vmax.f32 %v658_v39, %v659_v43  ;;  %v548_v55 = vrot.slane %v547_v45, 4  ;;  %v1527_v39 = vpop.f32.mrf.mxu1 }
 0x113   :  { %v669_v49 = vmax.f32 %v667_v32, %v668_v41  ;;  %v680_v56 = vrot.slane %v679_v46, 4  ;;  %v541_v57 = vrot.slane %v540_v47, 4  ;;  %v672_v2 = vsel %vm497_vm1, %v447_v52, -inf }
 0x114   :  { %v538_v58 = vrot.slane %v537_v48, 1  ;;  %v530_v60 = vmax.f32 %v528_v42, %v529_v50  ;;  %v661_v61 = vrot.slane %v660_v51, 2  ;;  %v549_v62 = vmax.f32 %v547_v45, %v548_v55 }
 0x115   :  { %v670_v59 = vrot.slane %v669_v49, 1  ;;  %v681_v63 = vmax.f32 %v679_v46, %v680_v56  ;;  %v542_v0 = vmax.f32 %v540_v47, %v541_v57  ;;  %v673_v13 = vrot.slane %v672_v2, 4 }
 0x116   :  { %v539_v3 = vmax.f32 %v537_v48, %v538_v58  ;;  %v531_v7 = vrot.slane %v530_v60, 1  ;;  %v662_v8 = vmax.f32 %v660_v51, %v661_v61  ;;  %v550_v9 = vrot.slane %v549_v62, 2 }
 0x117   :  { %v671_v6 = vmax.f32 %v669_v49, %v670_v59  ;;  %v682_v10 = vrot.slane %v681_v63, 2  ;;  %v543_v11 = vrot.slane %v542_v0, 2  ;;  %v674_v32 = vmax.f32 %v672_v2, %v673_v13  ;;  %v248_v49 = vpop.f32.mrf.mxu0  ;;  %v457_v59 = vpop.f32.mrf.mxu1 }
 0x118   :  { %v1869_v15 = vadd.f32 %v1812_v30, %v539_v3  ;;  %v532_v18 = vmax.f32 %v530_v60, %v531_v7  ;;  %v663_v20 = vrot.slane %v662_v8, 1  ;;  %v551_v24 = vmax.f32 %v549_v62, %v550_v9 }
 0x119   :  { %v1872_v16 = vadd.f32 %v1812_v30, %v671_v6  ;;  %v683_v28 = vmax.f32 %v681_v63, %v682_v10  ;;  %v544_v31 = vmax.f32 %v542_v0, %v543_v11  ;;  %v916_v33 = vrot.slane %v884_v53, 6  ;;  %v1502_v6 = vpop.f32.mrf.mxu0 }
 0x11a   :  { %v1877_v35 = vadd.f32 %v1812_v30, %v532_v18  ;;  %v664_v37 = vmax.f32 %v662_v8, %v663_v20  ;;  %v552_v40 = vrot.slane %v551_v24, 1  ;;  %v675_v43 = vrot.slane %v674_v32, 2 }
 0x11b   :  { %v871_v34 = vsub.f32 %v1869_v15, %v1872_v16  ;;  %v684_v41 = vrot.slane %v683_v28, 1  ;;  %v545_v42 = vrot.slane %v544_v31, 1  ;;  %v561_v48 = vsel %vm497_vm1, %v1499_v23, -inf  ;;  %v1530_v23 = vpop.f32.mrf.mxu1 }
 0x11c   :  { %v1883_v47 = vadd.f32 %v1812_v30, %v664_v37  ;;  %v553_v50 = vmax.f32 %v551_v24, %v552_v40  ;;  %v676_v53 = vmax.f32 %v674_v32, %v675_v43  ;;  %v1888_v55 = vsel %vm778_vm3, %v916_v33, %v1850_v25  ;;  %v258_v40 = vpop.f32.mrf.mxu0 }
 0x11d   :  { %v1880_v46 = vand.u32 2147483647, %v871_v34  ;;  %v685_v51 = vmax.f32 %v683_v28, %v684_v41  ;;  %v546_v52 = vmax.f32 %v544_v31, %v545_v42  ;;  %v562_v0 = vrot.slane %v561_v48, 4 }
 0x11e   :  { %v870_v58 = vsub.f32 %v1877_v35, %v1883_v47  ;;  %v1896_v61 = vadd.f32 %v1812_v30, %v553_v50  ;;  %v677_v63 = vrot.slane %v676_v53, 1  ;;  %v693_v2 = vsel %vm497_vm1, %v1527_v39, -inf }
 0x11f   :  { %v1899_v62 = vadd.f32 %v1812_v30, %v685_v51  ;;  %v554_v3 = vsel %vm497_vm1, %v248_v49, -inf  ;;  %v1908_v8 = vmul.f32 %v1883_v47, %v1877_v35  ;;  %v1911_v9 = vadd.f32 %v1812_v30, %v546_v52 }
 0x120   :  { %v1904_v7 = vand.u32 2147483647, %v870_v58  ;;  %v678_v10 = vmax.f32 %v676_v53, %v677_v63  ;;  %v563_v13 = vmax.f32 %v561_v48, %v562_v0  ;;  %v694_v18 = vrot.slane %v693_v2, 4 }
 0x121   :  { %v555_v20 = vrot.slane %v554_v3, 4  ;;  %v873_v24 = vsub.f32 %v1896_v61, %v1899_v62  ;;  %v686_v31 = vsel %vm497_vm1, %v457_v59, -inf  ;;  %v575_v32 = vsel %vm497_vm1, %v1502_v6, -inf }
 0x122   :  { %v1917_v28 = vadd.f32 %v1812_v30, %v678_v10  ;;  %v564_v33 = vrot.slane %v563_v13, 2  ;;  %v695_v34 = vmax.f32 %v693_v2, %v694_v18  ;;  %v687_v39 = vrot.slane %v686_v31, 4  ;;  %v467_v10 = vpop.f32.mrf.mxu1 }
 0x123   :  { %v556_v37 = vmax.f32 %v554_v3, %v555_v20  ;;  %v576_v43 = vrot.slane %v575_v32, 4  ;;  %v707_v48 = vsel %vm497_vm1, %v1530_v23, -inf  ;;  %v1925_v53 = vand.u32 2147483647, %v873_v24 }
 0x124   :  { %v872_v42 = vsub.f32 %v1911_v9, %v1917_v28  ;;  %v565_v49 = vmax.f32 %v563_v13, %v564_v33  ;;  %v696_v50 = vrot.slane %v695_v34, 2  ;;  %v688_v52 = vmax.f32 %v686_v31, %v687_v39 }
 0x125   :  { %v557_v51 = vrot.slane %v556_v37, 2  ;;  %v577_v58 = vmax.f32 %v575_v32, %v576_v43  ;;  %v708_v59 = vrot.slane %v707_v48, 4  ;;  %v568_v63 = vsel %vm497_vm1, %v258_v40, -inf }
 0x126   :  { %v566_v0 = vrot.slane %v565_v49, 1  ;;  %v697_v2 = vmax.f32 %v695_v34, %v696_v50  ;;  %v689_v6 = vrot.slane %v688_v52, 2  ;;  %v1928_v18 = vand.u32 2147483647, %v872_v42 }
 0x127   :  { %v558_v3 = vmax.f32 %v556_v37, %v557_v51  ;;  %v578_v20 = vrot.slane %v577_v58, 2  ;;  %v709_v11 = vmax.f32 %v707_v48, %v708_v59  ;;  %v569_v23 = vrot.slane %v568_v63, 4 }
 0x128   :  { %v567_v13 = vmax.f32 %v565_v49, %v566_v0  ;;  %v698_v33 = vrot.slane %v697_v2, 1  ;;  %v690_v31 = vmax.f32 %v688_v52, %v689_v6  ;;  %v700_v43 = vsel %vm497_vm1, %v467_v10, -inf }
 0x129   :  { %v559_v41 = vrot.slane %v558_v3, 1  ;;  %v579_v24 = vmax.f32 %v577_v58, %v578_v20  ;;  %v710_v39 = vrot.slane %v709_v11, 2  ;;  %v570_v32 = vmax.f32 %v568_v63, %v569_v23  ;;  %v1505_v58 = vpop.f32.mrf.mxu0 }
 0x12a   :  { %v623_v40 = vadd.f32 %v1812_v30, %v567_v13  ;;  %v699_v34 = vmax.f32 %v697_v2, %v698_v33  ;;  %v691_v50 = vrot.slane %v690_v31, 1  ;;  %v701_v57 = vrot.slane %v700_v43, 4 }
 0x12b   :  { %v560_v37 = vmax.f32 %v558_v3, %v559_v41  ;;  %v580_v51 = vrot.slane %v579_v24, 1  ;;  %v711_v42 = vmax.f32 %v709_v11, %v710_v39  ;;  %v571_v56 = vrot.slane %v570_v32, 2  ;;  %v1533_v39 = vpop.f32.mrf.mxu1 }
 0x12c   :  { %v795_v48 = vrot.slane %v623_v40, 7  ;;  %v751_v49 = vadd.f32 %v1812_v30, %v699_v34  ;;  %v692_v52 = vmax.f32 %v690_v31, %v691_v50  ;;  %v702_v10 = vmax.f32 %v700_v43, %v701_v57  ;;  %v268_v57 = vpop.f32.mrf.mxu0 }
 0x12d   :  { %v622_v59 = vadd.f32 %v1812_v30, %v560_v37  ;;  %v581_v0 = vmax.f32 %v579_v24, %v580_v51  ;;  %v712_v63 = vrot.slane %v711_v42, 1  ;;  %v572_v6 = vmax.f32 %v570_v32, %v571_v56 }
 0x12e   :  { %v843_v2 = vrot.slane %v751_v49, 7  ;;  %v875_v41 = vsub.f32 %v623_v40, %v751_v49  ;;  %v1935_v3 = vmul.f32 %v751_v49, %v623_v40  ;;  %v750_v23 = vadd.f32 %v1812_v30, %v692_v52 }
 0x12f   :  { %v713_v13 = vmax.f32 %v711_v42, %v712_v63  ;;  %v573_v33 = vrot.slane %v572_v6, 1  ;;  %v1940_v31 = vadd.f32 %v1812_v30, %v581_v0  ;;  %v703_v24 = vrot.slane %v702_v10, 2 }
 0x130   :  { %v891_v34 = vand.u32 2147483647, %v875_v41  ;;  %v589_v56 = vsel %vm497_vm1, %v1505_v58, -inf  ;;  %v1946_v40 = vsel %vm775_vm2, %v795_v48, %v622_v59  ;;  %v874_v37 = vsub.f32 %v622_v59, %v750_v23  ;;  %v477_v41 = vpop.f32.mrf.mxu1 }
 0x131   :  { %v1949_v50 = vsel %vm775_vm2, %v843_v2, %v750_v23  ;;  %v1952_v51 = vadd.f32 %v1812_v30, %v713_v13  ;;  %v574_v42 = vmax.f32 %v572_v6, %v573_v33  ;;  %v704_v49 = vmax.f32 %v702_v10, %v703_v24  ;;  %v1508_v24 = vpop.f32.mrf.mxu0 }
 0x132   :  { %v1954_v52 = vmul.f32 %v750_v23, %v622_v59  ;;  %v590_v58 = vrot.slane %v589_v56, 4  ;;  %v721_v0 = vsel %vm497_vm1, %v1533_v39, -inf  ;;  %v582_v63 = vsel %vm497_vm1, %v268_v57, -inf  ;;  %v1536_v20 = vpop.f32.mrf.mxu1 }
 0x133   :  { %v928_v11 = vrot.slane %v891_v34, 7  ;;  %v890_v48 = vand.u32 2147483647, %v874_v37  ;;  %v877_v32 = vsub.f32 %v1940_v31, %v1952_v51  ;;  %v1962_v2 = vmul.f32 %v1952_v51, %v1940_v31  ;;  %v278_v26 = vpop.f32.mrf.mxu0 }
 0x134   :  { %v705_v10 = vrot.slane %v704_v49, 1  ;;  %v591_v59 = vmax.f32 %v589_v56, %v590_v58  ;;  %v722_v23 = vrot.slane %v721_v0, 4  ;;  %v624_v39 = vadd.f32 %v1812_v30, %v574_v42 }
 0x135   :  { %v1966_v33 = vand.u32 2147483647, %v877_v32  ;;  %v583_v34 = vrot.slane %v582_v63, 4  ;;  %v714_v21 = vsel %vm497_vm1, %v477_v41, -inf  ;;  %v929_v36 = vsel %vm775_vm2, %v928_v11, %v890_v48 }
 0x136   :  { %v706_v57 = vmax.f32 %v704_v49, %v705_v10  ;;  %v592_v37 = vrot.slane %v591_v59, 2  ;;  %v723_v60 = vmax.f32 %v721_v0, %v722_v23  ;;  %v715_v58 = vrot.slane %v714_v21, 4 }
 0x137   :  { %v584_v56 = vmax.f32 %v582_v63, %v583_v34  ;;  %v603_v42 = vsel %vm497_vm1, %v1508_v24, -inf  ;;  %v735_v0 = vsel %vm497_vm1, %v1536_v20, -inf  ;;  %v797_v23 = vrot.slane %v624_v39, 6 }
 0x138   :  { %v1973_v13 = vadd.f32 %v1812_v30, %v706_v57  ;;  %v593_v32 = vmax.f32 %v591_v59, %v592_v37  ;;  %v724_v43 = vrot.slane %v723_v60, 2  ;;  %v716_v49 = vmax.f32 %v714_v21, %v715_v58 }
 0x139   :  { %v585_v25 = vrot.slane %v584_v56, 2  ;;  %v604_v10 = vrot.slane %v603_v42, 4  ;;  %v736_v21 = vrot.slane %v735_v0, 4 }
 0x13a   :  { %v876_v11 = vsub.f32 %v624_v39, %v1973_v13  ;;  %v594_v48 = vrot.slane %v593_v32, 1  ;;  %v725_v63 = vmax.f32 %v723_v60, %v724_v43  ;;  %v717_v6 = vrot.slane %v716_v49, 2 }
 0x13b   :  { %v586_v34 = vmax.f32 %v584_v56, %v585_v25  ;;  %v605_v57 = vmax.f32 %v603_v42, %v604_v10  ;;  %v1980_v37 = vmul.f32 %v1973_v13, %v624_v39  ;;  %v737_v1 = vmax.f32 %v735_v0, %v736_v21  ;;  %v487_v10 = vpop.f32.mrf.mxu1 }
 0x13c   :  { %v892_v59 = vand.u32 2147483647, %v876_v11  ;;  %v595_v24 = vmax.f32 %v593_v32, %v594_v48  ;;  %v726_v58 = vrot.slane %v725_v63, 1  ;;  %v718_v20 = vmax.f32 %v716_v49, %v717_v6 }
 0x13d   :  { %v587_v29 = vrot.slane %v586_v34, 1  ;;  %v606_v27 = vrot.slane %v605_v57, 2  ;;  %v596_v60 = vsel %vm497_vm1, %v278_v26, -inf  ;;  %v1988_v39 = vsel %vm778_vm3, %v797_v23, %v1946_v40  ;;  %v1039_v23 = vld [vmem:[#allocation8 + $0xa8] sm:$0xff] }
 0x13e   :  { %v930_v41 = vrot.slane %v892_v59, 6  ;;  %v1983_v45 = vadd.f32 %v1812_v30, %v595_v24  ;;  %v727_v25 = vmax.f32 %v725_v63, %v726_v58  ;;  %v719_v56 = vrot.slane %v718_v20, 1  ;;  %1427 = vmatprep.subr.mxu0 %v1039_v23  ;;  %v1021_v23 = vld [vmem:[#allocation8 + $0x18] sm:$0xff] }
 0x13f   :  { %v588_v43 = vmax.f32 %v586_v34, %v587_v29  ;;  %v607_v42 = vmax.f32 %v605_v57, %v606_v27  ;;  %v738_v6 = vrot.slane %v737_v1, 2  ;;  %v597_v49 = vrot.slane %v596_v60, 4  ;;  %v1023_v34 = vld [vmem:[#allocation8 + $0x28] sm:$0xff]  ;;  %v1038_v57 = vld [vmem:[#allocation8 + $0xa0] sm:$0xff] }
 0x140   :  { %v1992_v11 = vadd.f32 %v1812_v30, %v727_v25  ;;  %v720_v26 = vmax.f32 %v718_v20, %v719_v56  ;;  %v728_v40 = vsel %vm497_vm1, %v487_v10, -inf  ;;  %v2000_v59 = vsel %vm778_vm3, %v930_v41, %v929_v36  ;;  %1428 = vmatpush3.msra.mxu0 %v1023_v34  ;;  %v1036_v34 = vld [vmem:[#allocation8 + $0x90] sm:$0xff] }
 0x141   :  { %v1995_v0 = vadd.f32 %v1812_v30, %v588_v43  ;;  %v608_v48 = vrot.slane %v607_v42, 1  ;;  %v739_v29 = vmax.f32 %v737_v1, %v738_v6  ;;  %v598_v63 = vmax.f32 %v596_v60, %v597_v49  ;;  %v1022_v1 = vld [vmem:[#allocation8 + $0x20] sm:$0xff]  ;;  %1429 = vmatprep.subr.mxu0 %v1038_v57  ;;  %v1020_v57 = vld [vmem:[#allocation8 + $0x10] sm:$0xff] }
 0x142   :  { %v879_v24 = vsub.f32 %v1983_v45, %v1992_v11  ;;  %v2005_v21 = vadd.f32 %v1812_v30, %v720_v26  ;;  %v729_v43 = vrot.slane %v728_v40, 4  ;;  %v951_v56 = vmul.f32 %v1872_v16, %v1869_v15  ;;  %1430 = vmatpush3.msra.mxu0 %v1022_v1  ;;  %v1035_v1 = vld [vmem:[#allocation8 + $0x88] sm:$0xff] }
 0x143   :  { %2193 = vst [vmem:[#allocation13_spill] sm:$0xff] %v1995_v0  ;;  %v609_v58 = vmax.f32 %v607_v42, %v608_v48  ;;  %v740_v60 = vrot.slane %v739_v29, 1  ;;  %v599_v25 = vrot.slane %v598_v63, 2  ;;  %v952_v42 = vmul.f32 %v1917_v28, %v1911_v9  ;;  %v1037_v48 = vld [vmem:[#allocation8 + $0x98] sm:$0xff] }
 0x144   :  { %v878_v41 = vsub.f32 %v1995_v0, %v2005_v21  ;;  %v730_v26 = vmax.f32 %v728_v40, %v729_v43  ;;  %v2018_v20 = vand.u32 2147483647, %v879_v24  ;;  %v953_v27 = vmul.f32 %v1899_v62, %v1896_v61  ;;  %1431 = vmatprep.subr.mxu0 %v1037_v48 }
 0x145   :  { %v2016_v10 = vadd.f32 %v1812_v30, %v609_v58  ;;  %v741_v6 = vmax.f32 %v739_v29, %v740_v60  ;;  %v600_v49 = vmax.f32 %v598_v63, %v599_v25  ;;  %v2194_v40 = vrot.slane %v1816_v54, 7  ;;  %1432 = vmatpush3.msra.mxu0 %v1021_v23 }
 0x146   :  { %v2021_v32 = vand.u32 2147483647, %v878_v41  ;;  %v731_v63 = vrot.slane %v730_v26, 2  ;;  %v958_v60 = vmul.f32 %v2005_v21, %v1995_v0  ;;  %v2195_v25 = vrot.slane %v1858_v38, 6  ;;  %1433 = vmatprep.subr.mxu0 %v1036_v34  ;;  %v1034_v0 = vld [vmem:[#allocation8 + $0x80] sm:$0xff] }
 0x147   :  { %v2026_v58 = vadd.f32 %v1812_v30, %v741_v6  ;;  %v601_v29 = vrot.slane %v600_v49, 1  ;;  %v979_v24 = vsel %vm775_vm2, %v2194_v40, %v1839_v17  ;;  %v984_v41 = vrot.slane %v1908_v8, 4  ;;  %1434 = vmatpush3.msra.mxu0 %v1020_v57  ;;  %v1019_v40 = vld [vmem:[#allocation8 + $0x8] sm:$0xff] }
 0x148   :  { %v981_v43 = vsel %vm778_vm3, %v2195_v25, %v979_v24  ;;  %v986_v6 = vrot.slane %v951_v56, 3  ;;  %v732_v54 = vmax.f32 %v730_v26, %v731_v63  ;;  %v2196_v17 = vrot.slane %v1837_v14, 5  ;;  %1435 = vmatprep.subr.mxu0 %v1035_v1 }
 0x149   :  { %v881_v48 = vsub.f32 %v2016_v10, %v2026_v58  ;;  %v602_v36 = vmax.f32 %v600_v49, %v601_v29  ;;  %v936_v38 = vrot.slane %v2018_v20, 3  ;;  %v988_v25 = vrot.slane %v952_v42, 2  ;;  %v1018_v49 = vld [vmem:[#allocation8] sm:$0xff]  ;;  %1436 = vmatpush3.msra.mxu0 %v1019_v40 }
 0x14a   :  { %v983_v23 = vsel %vm781_vm4, %v2196_v17, %v981_v43  ;;  %v2197_v8 = vrot.slane %v1843_v19, 6  ;;  %v934_v26 = vrot.slane %v2021_v32, 4  ;;  %v733_v14 = vrot.slane %v732_v54, 1  ;;  %1437 = vmatprep.subr.mxu0 %v1034_v0 }
 0x14b   :  { %v985_v24 = vsel %vm784_vm5, %v984_v41, %v983_v23  ;;  %v990_v57 = vrot.slane %v953_v27, 1  ;;  %v2051_v29 = vand.u32 2147483647, %v881_v48  ;;  %v2054_v63 = vadd.f32 %v1812_v30, %v602_v36  ;;  %1438 = vmatpush3.msra.mxu0 %v1018_v49 }
 0x14c   :  { %v832_v56 = vsel %vm778_vm3, %v2197_v8, %v1831_v12  ;;  %v987_v34 = vsel %vm787_vm6, %v986_v6, %v985_v24  ;;  %v839_v19 = vrot.slane %v1917_v28, 2  ;;  %v734_v12 = vmax.f32 %v732_v54, %v733_v14 }
 0x14d   :  { %v989_v42 = vsel %vm790_vm7, %v988_v25, %v987_v34  ;;  %v2198_v32 = vrot.slane %v1825_v5, 5  ;;  %v837_v27 = vrot.slane %v1872_v16, 3  ;;  %v2199_v36 = vrot.slane %v1883_v47, 4 }
 0x14e   :  { %v991_v1 = vsel %vm793_vm8, %v990_v57, %v989_v42  ;;  %v841_v28 = vrot.slane %v1899_v62, 1  ;;  %v959_v0 = vmul.f32 %v1992_v11, %v1983_v45  ;;  %v961_v5 = vmul.f32 %v2026_v58, %v2016_v10 }
 0x14f   :  { %v834_v43 = vsel %vm781_vm4, %v2198_v32, %v832_v56  ;;  %1006 = vrot.lane.b32.xlu0 %v991_v1, %s1714_s13  ;;  %v756_v6 = vadd.f32 %v1812_v30, %v734_v12  ;;  %v2200_v48 = vrot.slane %v1935_v3, 7  ;;  %v998_v47 = vrot.slane %v958_v60, 4 }
 0x150   :  { %v836_v41 = vsel %vm784_vm5, %v2199_v36, %v834_v43  ;;  %v805_v17 = vrot.slane %v2054_v63, 2  ;;  %v2201_v23 = vrot.slane %v1980_v37, 6  ;;  %v1000_v24 = vrot.slane %v959_v0, 3 }
 0x151   :  { %v838_v16 = vsel %vm787_vm6, %v837_v27, %v836_v41  ;;  %v993_v54 = vsel %vm775_vm2, %v2200_v48, %v1954_v52  ;;  %v880_v25 = vsub.f32 %v2054_v63, %v756_v6  ;;  %v960_v8 = vmul.f32 %v756_v6, %v2054_v63 }
 0x152   :  { %v840_v62 = vsel %vm790_vm7, %v839_v19, %v838_v16  ;;  %v995_v40 = vsel %vm778_vm3, %v2201_v23, %v993_v54  ;;  %v2202_v3 = vrot.slane %v1962_v2, 5  ;;  %v1004_v56 = vrot.slane %v961_v5, 1 }
 0x153   :  { %v842_v30 = vsel %vm793_vm8, %v841_v28, %v840_v62  ;;  %v2203_v37 = vrot.slane %v1973_v13, 6  ;;  %v851_v14 = vrot.slane %v1992_v11, 3  ;;  %v896_v34 = vand.u32 2147483647, %v880_v25 }
 0x154   :  { %v997_v52 = vsel %vm781_vm4, %v2202_v3, %v995_v40  ;;  %857 = vrot.lane.b32.xlu0 %v842_v30, %s1714_s13  ;;  %v1002_v57 = vrot.slane %v960_v8, 2  ;;  %v2204_v63 = vrot.slane %v1952_v51, 5  ;;  %v853_v42 = vrot.slane %v756_v6, 2 }
 0x155   :  { %v999_v60 = vsel %vm784_vm5, %v998_v47, %v997_v52  ;;  %v846_v49 = vsel %vm778_vm3, %v2203_v37, %v1949_v50  ;;  %v2205_v12 = vrot.slane %v2005_v21, 4  ;;  %v855_v32 = vrot.slane %v2026_v58, 1  ;;  %v1146_v37 = vld [vmem:[#allocation8 + $0x170] sm:$0xff] }
 0x156   :  { %v848_v2 = vsel %vm781_vm4, %v2204_v63, %v846_v49  ;;  %v1001_v19 = vsel %vm787_vm6, %v1000_v24, %v999_v60  ;;  %v2206_v50 = vrot.slane %v1846_v22, 5  ;;  %v938_v11 = vrot.slane %v896_v34, 2  ;;  %v1145_v49 = vld [vmem:[#allocation8 + $0x168] sm:$0xff]  ;;  %v1143_v34 = vld [vmem:[#allocation8 + $0x158] sm:$0xff] }
 0x157   :  { %v850_v1 = vsel %vm784_vm5, %v2205_v12, %v848_v2  ;;  %v1003_v43 = vsel %vm790_vm7, %v1002_v57, %v1001_v19  ;;  %v2207_v51 = vrot.slane %v1904_v7, 4  ;;  %v2208_v36 = vrot.slane %v1822_v4, 5  ;;  %v1142_v57 = vld [vmem:[#allocation8 + $0x150] sm:$0xff]  ;;  %v1141_v63 = vld [vmem:[#allocation8 + $0x148] sm:$0xff]  ;;  %v1140_v2 = vld [vmem:[#allocation8 + $0x140] sm:$0xff] }
 0x158   :  { %v919_v13 = vsel %vm781_vm4, %v2206_v50, %v1888_v55  ;;  %v1005_v41 = vsel %vm793_vm8, %v1004_v56, %v1003_v43  ;;  %v852_v58 = vsel %vm787_vm6, %v851_v14, %v850_v1  ;;  %v2209_v22 = vrot.slane %v1880_v46, 3  ;;  %v1147_v56 = vld [vmem:[#allocation8 + $0x178] sm:$0xff]  ;;  %v1144_v14 = vld [vmem:[#allocation8 + $0x160] sm:$0xff]  ;;  %v1138_v19 = vld [vmem:[#allocation8 + $0x130] sm:$0xff] }
 0x159   :  { %v921_v27 = vsel %vm784_vm5, %v2207_v51, %v919_v13  ;;  %v782_v21 = vsel %vm781_vm4, %v2208_v36, %v1862_v44  ;;  %v2210_v28 = vrot.slane %v1877_v35, 4  ;;  %1008 = vrot.lane.b32.xlu1 %v1005_v41, %s1714_s13  ;;  %v854_v7 = vsel %vm790_vm7, %v853_v42, %v852_v58  ;;  %1537 = vmatprep.subr.mxu1 %v1147_v56  ;;  %v1139_v42 = vld [vmem:[#allocation8 + $0x138] sm:$0xff]  ;;  %v1137_v12 = vld [vmem:[#allocation8 + $0x128] sm:$0xff]  ;;  %v1136_v1 = vld [vmem:[#allocation8 + $0x120] sm:$0xff] }
 0x15a   :  { %v923_v55 = vsel %vm787_vm6, %v2209_v22, %v921_v27  ;;  %v2211_v4 = vrot.slane %v1928_v18, 2  ;;  %v2212_v5 = vrot.slane %v1869_v15, 3  ;;  %v2213_v46 = vrot.slane %v1966_v33, 5  ;;  %1538 = vmatpush3.msra.mxu1 %v1147_v56  ;;  %v1245_v50 = vld [vmem:[#allocation8 + $0x1f8] sm:$0xff]  ;;  %v1244_v13 = vld [vmem:[#allocation8 + $0x1f0] sm:$0xff]  ;;  %v1243_v43 = vld [vmem:[#allocation8 + $0x1e8] sm:$0xff] }
 0x15b   :  { %v785_v0 = vsel %vm784_vm5, %v2210_v28, %v782_v21  ;;  %v2214_v35 = vrot.slane %v1925_v53, 1  ;;  %v2215_v54 = vrot.slane %v1911_v9, 2  ;;  %v2216_v15 = vrot.slane %v1940_v31, 5  ;;  %1539 = vmatprep.subr.mxu1 %v1146_v37  ;;  %1572 = vmatprep.subr.mxu0 %v1245_v50  ;;  %v1133_v51 = vld [vmem:[#allocation8 + $0x108] sm:$0xff]  ;;  %v1242_v27 = vld [vmem:[#allocation8 + $0x1e0] sm:$0xff]  ;;  %v1241_v21 = vld [vmem:[#allocation8 + $0x1d8] sm:$0xff] }
 0x15c   :  { %v925_v44 = vsel %vm790_vm7, %v2211_v4, %v923_v55  ;;  %v788_v6 = vsel %vm787_vm6, %v2212_v5, %v785_v0  ;;  %v933_v16 = vsel %vm781_vm4, %v2213_v46, %v2000_v59  ;;  %v940_v23 = vrot.slane %v2051_v29, 1  ;;  %v2218_v59 = vld [vmem:[#allocation13_spill] sm:$0xff]  ;;  %1540 = vmatpush3.msra.mxu1 %v1146_v37  ;;  %v1240_v41 = vld [vmem:[#allocation8 + $0x1d0] sm:$0xff] }
 0x15d   :  { %v927_v48 = vsel %vm793_vm8, %v2214_v35, %v925_v44  ;;  %v791_v47 = vsel %vm790_vm7, %v2215_v54, %v788_v6  ;;  %v935_v18 = vsel %vm784_vm5, %v934_v26, %v933_v16  ;;  %v800_v62 = vsel %vm781_vm4, %v2216_v15, %v1988_v39  ;;  %1541 = vmatprep.subr.mxu1 %v1145_v49  ;;  %v1132_v36 = vld [vmem:[#allocation8 + $0x100] sm:$0xff]  ;;  %v1368_v22 = vld [vmem:[%s2190_s4 + $0x1] ss:$0 sm:$0xff]  ;;  %v1239_v16 = vld [vmem:[#allocation8 + $0x1c8] sm:$0xff] }
 0x15e   :  { %944 = vst.msk [vmem:[#allocation2 + $0x8] sm:$0xff] %vm497_vm1, %v927_v48  ;;  %v2217_v33 = vrot.slane %v1896_v61, 1  ;;  %v937_v9 = vsel %vm787_vm6, %v936_v38, %v935_v18  ;;  %v2219_v40 = vrot.slane %v2218_v59, 4  ;;  %v807_v31 = vrot.slane %v2016_v10, 1  ;;  %1542 = vmatpush3.msra.mxu1 %v1145_v49  ;;  %v1238_v35 = vld [vmem:[#allocation8 + $0x1c0] sm:$0xff]  ;;  %v1237_v48 = vld [vmem:[#allocation8 + $0x1b8] sm:$0xff] }
 0x15f   :  { %v856_v39 = vsel %vm793_vm8, %v855_v32, %v854_v7  ;;  %v939_v29 = vsel %vm790_vm7, %v938_v11, %v937_v9  ;;  %v2220_v61 = vrot.slane %v1983_v45, 3  ;;  %1543 = vmatprep.subr.mxu1 %v1144_v14  ;;  %v1135_v32 = vld [vmem:[#allocation8 + $0x118] sm:$0xff]  ;;  %v1134_v11 = vld [vmem:[#allocation8 + $0x110] sm:$0xff]  ;;  %v1234_v18 = vld [vmem:[#allocation8 + $0x1a0] sm:$0xff] }
 0x160   :  { %v794_v53 = vsel %vm793_vm8, %v2217_v33, %v791_v47  ;;  %v802_v26 = vsel %vm784_vm5, %v2219_v40, %v800_v62  ;;  %859 = vrot.lane.b32.xlu1 %v856_v39, %s1714_s13  ;;  %v941_v20 = vsel %vm793_vm8, %v940_v23, %v939_v29  ;;  %1544 = vmatpush3.msra.mxu1 %v1144_v14  ;;  %v1236_v54 = vld [vmem:[#allocation8 + $0x1b0] sm:$0xff]  ;;  %v1235_v47 = vld [vmem:[#allocation8 + $0x1a8] sm:$0xff]  ;;  %v1233_v15 = vld [vmem:[#allocation8 + $0x198] sm:$0xff] }
 0x161   :  { %811 = vst.msk [vmem:[#allocation2] sm:$0xff] %vm497_vm1, %v794_v53  ;;  %v804_v24 = vsel %vm787_vm6, %v2220_v61, %v802_v26  ;;  %945 = vst.msk [vmem:[#allocation2 + $0x18] sm:$0xff] %vm497_vm1, %v941_v20  ;;  %1545 = vmatprep.subr.mxu1 %v1143_v34  ;;  %v1232_v62 = vld [vmem:[#allocation8 + $0x190] sm:$0xff]  ;;  %v1231_v23 = vld [vmem:[#allocation8 + $0x188] sm:$0xff] }
 0x162   :  { %v806_v38 = vsel %vm790_vm7, %v805_v17, %v804_v24  ;;  %1546 = vmatpush3.msra.mxu1 %v1143_v34  ;;  %v1230_v33 = vld [vmem:[#allocation8 + $0x180] sm:$0xff]  ;;  %v1369_v53 = vld [vmem:[%s2190_s4 + $0x2] ss:$0 sm:$0xff]  ;;  %v1370_v29 = vld [vmem:[%s2190_s4 + $0x3] ss:$0 sm:$0xff] }
 0x163   :  { %v808_v10 = vsel %vm793_vm8, %v807_v31, %v806_v38  ;;  %1547 = vmatprep.subr.mxu1 %v1142_v57 }
 0x164   :  { %812 = vst.msk [vmem:[#allocation2 + $0x10] sm:$0xff] %vm497_vm1, %v808_v10  ;;  %1548 = vmatpush3.msra.mxu1 %v1142_v57 }
 0x165   :  { %1549 = vmatprep.subr.mxu1 %v1141_v63 }
 0x166   :  { %1550 = vmatpush3.msra.mxu1 %v1141_v63 }
 0x167   :  { %1551 = vmatprep.subr.mxu1 %v1140_v2 }
 0x168   :  { %1552 = vmatpush3.msra.mxu1 %v1140_v2 }
 0x169   :  { %1553 = vmatprep.subr.mxu1 %v1139_v42 }
 0x16a   :  { %1554 = vmatpush3.msra.mxu1 %v1139_v42 }
 0x16b   :  { %1555 = vmatprep.subr.mxu1 %v1138_v19 }
 0x16c   :  { %1556 = vmatpush3.msra.mxu1 %v1138_v19 }
 0x16d   :  { %1557 = vmatprep.subr.mxu1 %v1137_v12 }
 0x16e   :  { %1558 = vmatpush3.msra.mxu1 %v1137_v12 }
 0x16f   :  { %1559 = vmatprep.subr.mxu1 %v1136_v1 }
 0x170   :  { %1560 = vmatpush3.msra.mxu1 %v1136_v1 }
 0x171   :  { %1561 = vmatprep.subr.mxu1 %v1135_v32 }
 0x172   :  { %1562 = vmatpush3.msra.mxu1 %v1135_v32 }
 0x173   :  { %1563 = vmatprep.subr.mxu1 %v1134_v11 }
 0x174   :  { %1564 = vmatpush3.msra.mxu1 %v1134_v11 }
 0x175   :  { %1565 = vmatprep.subr.mxu1 %v1133_v51 }
 0x176   :  { %1566 = vmatpush3.msra.mxu1 %v1133_v51 }
 0x177   :  { %1567 = vmatprep.subr.mxu1 %v1132_v36 }
 0x178   :  { %1568 = vmatpush3.msra.mxu1 %v1132_v36 }
 0x1c1   :  { %v1007_v25 = vpop.permute.xlu0 %1006 }
 0x1c2   :  { %1012 = vst.msk [vmem:[#allocation2 + $0x8] sm:$0xff] %vm863_vm9, %v1007_v25 }
 0x1c6   :  { %v858_v30 = vpop.permute.xlu0 %857 }
 0x1c7   :  { %864 = vst.msk [vmem:[#allocation2] sm:$0xff] %vm863_vm9, %v858_v30 }
 0x1c9   :  { %v1015_v45 = vld [vmem:[#allocation2 + $0x8] sm:$0xff] }
 0x1ca   :  { %1119 = vmatprep.mubr.f32.mxu0 %v1015_v45 }
 0x1cb   :  { %v1009_v8 = vpop.permute.xlu1 %1008 }
 0x1cc   :  { %1013 = vst.msk [vmem:[#allocation2 + $0x18] sm:$0xff] %vm863_vm9, %v1009_v8 }
 0x1ce   :  { %v1014_v3 = vld [vmem:[#allocation2] sm:$0xff] }
 0x1cf   :  { %1120 = vmatmul.mubr.f32.vlgmr.msra.gmra.mxu0 %v1014_v3 }
 0x1d0   :  { %1573 = vmatpush3.msra.mxu0 %v1245_v50 }
 0x1d1   :  { %1574 = vmatprep.subr.mxu0 %v1244_v13 }
 0x1d2   :  { %v860_v52 = vpop.permute.xlu1 %859  ;;  %1575 = vmatpush3.msra.mxu0 %v1244_v13 }
 0x1d3   :  { %865 = vst.msk [vmem:[#allocation2 + $0x10] sm:$0xff] %vm863_vm9, %v860_v52  ;;  %v1017_v17 = vld [vmem:[#allocation2 + $0x18] sm:$0xff]  ;;  %1576 = vmatprep.subr.mxu0 %v1243_v43 }
 0x1d4   :  { %1124 = vmatprep.mubr.f32.mxu0 %v1017_v17  ;;  %1577 = vmatpush3.msra.mxu0 %v1243_v43 }
 0x1d5   :  { %1578 = vmatprep.subr.mxu0 %v1242_v27 }
 0x1d6   :  { %1579 = vmatpush3.msra.mxu0 %v1242_v27 }
 0x1d7   :  { %1580 = vmatprep.subr.mxu0 %v1241_v21 }
 0x1d8   :  { %1581 = vmatpush3.msra.mxu0 %v1241_v21 }
 0x1d9   :  { %1582 = vmatprep.subr.mxu0 %v1240_v41 }
 0x1da   :  { %v1016_v60 = vld [vmem:[#allocation2 + $0x10] sm:$0xff]  ;;  %1583 = vmatpush3.msra.mxu0 %v1240_v41 }
 0x1db   :  { %1125 = vmatmul.mubr.f32.gmra.mxu0 %v1016_v60  ;;  %1584 = vmatprep.subr.mxu0 %v1239_v16 }
 0x1dc   :  { %1585 = vmatpush3.msra.mxu0 %v1239_v16 }
 0x1dd   :  { %1586 = vmatprep.subr.mxu0 %v1238_v35 }
 0x1de   :  { %1587 = vmatpush3.msra.mxu0 %v1238_v35 }
 0x1df   :  { %1588 = vmatprep.subr.mxu0 %v1237_v48 }
 0x1e0   :  { %1589 = vmatpush3.msra.mxu0 %v1237_v48 }
 0x1e1   :  { %1590 = vmatprep.subr.mxu0 %v1236_v54 }
 0x1e2   :  { %1591 = vmatpush3.msra.mxu0 %v1236_v54 }
 0x1e3   :  { %1592 = vmatprep.subr.mxu0 %v1235_v47 }
 0x1e4   :  { %1593 = vmatpush3.msra.mxu0 %v1235_v47 }
 0x1e5   :  { %1594 = vmatprep.subr.mxu0 %v1234_v18 }
 0x1e6   :  { %1595 = vmatpush3.msra.mxu0 %v1234_v18 }
 0x1e7   :  { %1596 = vmatprep.subr.mxu0 %v1233_v15 }
 0x1e8   :  { %1597 = vmatpush3.msra.mxu0 %v1233_v15 }
 0x1e9   :  { %1598 = vmatprep.subr.mxu0 %v1232_v62 }
 0x1ea   :  { %1599 = vmatpush3.msra.mxu0 %v1232_v62 }
 0x1eb   :  { %1600 = vmatprep.subr.mxu0 %v1231_v23 }
 0x1ec   :  { %1601 = vmatpush3.msra.mxu0 %v1231_v23 }
 0x1ed   :  { %1602 = vmatprep.subr.mxu0 %v1230_v33 }
 0x1ee   :  { %1603 = vmatpush3.msra.mxu0 %v1230_v33 }
 0x28f   :  { %v1439_v58 = vpop.f32.mrf.mxu0 }
 0x291   :  { %v1440_v55 = vpop.f32.mrf.mxu0 }
 0x292   :  { %v1441_v28 = vadd.f32 %v1440_v55, %v1439_v58 }
 0x294   :  { %v1122_v0 = vadd.f32 %v1441_v28, %v1368_v22 }
 0x296   :  { %1614 = vtanh.f32 %v1122_v0 }
 0x29b   :  { %v1442_v7 = vpop.f32.mrf.mxu0 }
 0x29d   :  { %v1443_v4 = vpop.f32.mrf.mxu0 }
 0x29e   :  { %v1444_v44 = vadd.f32 %v1443_v4, %v1442_v7 }
 0x2a0   :  { %v1127_v5 = vadd.f32 %v1444_v44, %v1368_v22 }
 0x2a2   :  { %1616 = vtanh.f32 %v1127_v5 }
 0x2a3   :  { %v1615_v6 = vpop.eup %1614 }
 0x2a4   :  { %1569 = vmatprep.mubr.f32.mxu1 %v1615_v6 }
 0x2af   :  { %v1617_v46 = vpop.eup %1616 }
 0x2b0   :  { %1570 = vmatmul.mubr.f32.vlgmr.msra.gmra.mxu1 %v1617_v46 }
 0x370   :  { %v1571_v9 = vpop.f32.mrf.mxu1 }
 0x371   :  { %v1225_v59 = vadd.f32 %v1571_v9, %v1369_v53 }
 0x372   :  { %v1219_v40 = vpop.f32.mrf.mxu1 }
 0x373   :  { %v1220_v26 = vadd.f32 %v1369_v53, %v1219_v40 }
 0x375   :  { %1618 = vtanh.f32 %v1220_v26 }
 0x376   :  { %1620 = vtanh.f32 %v1225_v59 }
 0x382   :  { %v1619_v31 = vpop.eup %1618 }
 0x383   :  { %v1621_v39 = vpop.eup %1620  ;;  %1604 = vmatprep.mubr.f32.mxu0 %v1619_v31 }
 0x384   :  { %1605 = vmatmul.mubr.f32.vlgmr.msra.gmra.mxu0 %v1621_v39 }
 0x444   :  { %v1606_v61 = vpop.f32.mrf.mxu0 }
 0x445   :  { %v1323_v24 = vadd.f32 %v1606_v61, %v1370_v29 }
 0x446   :  { %v1317_v20 = vpop.f32.mrf.mxu0 }
 0x447   :  { %1327 = vst [vmem:[%s2191_s5 + $0x8] sm:$0xff] %v1323_v24  ;;  %v1318_v38 = vadd.f32 %v1370_v29, %v1317_v20 }
 0x449   :  { %1326 = vst [vmem:[%s2191_s5] sm:$0xff] %v1318_v38 }
 0x44a   :  { %1332 = vsyncpa [#allocation4], 1 }
 0x44b   :  { %1333 = vsyncpa [#allocation6], 1 }
 0x44c   :  { %1334 = vsyncpa [#allocation9], 1 }

</bundles_post_ra>
